<compile_context>
chip_gen: v7x
topology: tpu7x:2x2x1
jax: 0.10.0
libtpu: 0.0.40
codegen_flags: <defaults>
</compile_context>

<pallas_src>
import math

import jax
import jax.numpy as jnp
from jax.experimental import pallas as pl
from jax.experimental.pallas import tpu as pltpu


def _unitcircle_tile_kernel(scale_ref, xi_ref, xj_ref, u_ref, v_ref, o_ref):
    """One (TI, TJ) output tile.

    out = clip(scale * (xi @ xj^T) + u_i + v_j, 0, 1)
    with scale = 2/p, u_i = 1 - |x_i|^2/p, v_j = -|x_j|^2/p
      ==  max(0, 1 - ||x_j - x_i||^2 / p)   for p > 0.
    """
    cross = jax.lax.dot_general(
        xi_ref[...], xj_ref[...], (((1,), (1,)), ((), ())),
        preferred_element_type=jnp.float32)                 # (TI, TJ) on the MXU
    t = cross * scale_ref[0] + (u_ref[...] + v_ref[...])    # folded epilogue
    o_ref[...] = jnp.clip(t, 0.0, 1.0).astype(o_ref.dtype)


def _pick_tiles(n, d, in_itemsize, ti_target, tj_target, vmem_budget_bytes):
    """(8,128)-aligned tiles (or full-N blocks) sized to a VMEM budget."""
    def fit(target, align):
        if n <= target:
            return n                                   # full-dim block is always legal
        return max(align, (target // align) * align)

    ti = fit(ti_target, 8)
    tj = fit(tj_target, 128)

    def working_set(a, b):
        x_bytes = 2 * (a + b) * d * in_itemsize        # double-buffered xi + xj tiles
        o_bytes = 2 * a * b * 4                        # double-buffered f32 out tile
        uv_bytes = 2 * (a * 128 + 8 * b) * 4           # padded u/v tiles
        return x_bytes + o_bytes + uv_bytes + (1 << 16)

    def shrink(t, align):
        return max(align, ((t // 2) // align) * align)

    # Shrink TJ first (keeps TI large -> fewer xj re-fetches; TJ stays a 128-multiple
    # so output stores stay full-width), then TI.
    while working_set(ti, tj) > vmem_budget_bytes and tj > 128:
        tj = shrink(tj, 128)
    while working_set(ti, tj) > vmem_budget_bytes and ti > 8:
        ti = shrink(ti, 8)
    return ti, tj


def unitcircle_forward(vct, ori_kernel_fish_posnum, *,
                       ti_target=512, tj_target=512,
                       vmem_budget_bytes=20 * 1024 * 1024,
                       vmem_limit_bytes=32 * 1024 * 1024):
    """vct: (..., N, D). Returns (..., N, N) float32 with
    out[..., i, j] = max(0, 1 - ||vct[..., j, :] - vct[..., i, :]||^2 / (p + 1e-40)).
    """
    vct = jnp.asarray(vct)
    if vct.dtype not in (jnp.float32, jnp.bfloat16, jnp.float16):
        vct = vct.astype(jnp.float32)
    *lead, N, D = vct.shape
    B = math.prod(lead) if lead else 1
    x = vct.reshape(B, N, D)                                   # native dtype, no upcast

    # ---- hoisted scalar + per-point terms (tiny O(B*N*D) work, done by XLA) ----
    p = jnp.asarray(ori_kernel_fish_posnum, jnp.float32)
    denom = p + jnp.float32(1e-40)
    # Guard TPU f32 flush-to-zero of subnormals (torch keeps 1e-40): avoid 1/0 -> NaN
    # on the diagonal when p underflows, while preserving sign for |denom| >= min normal.
    min_normal = jnp.float32(1.1754944e-38)
    denom = jnp.where(jnp.abs(denom) < min_normal,
                      jnp.where(denom < 0, -min_normal, min_normal), denom)
    inv_p = jnp.float32(1.0) / denom

    sq = jnp.sum(x.astype(jnp.float32) ** 2, axis=-1)          # (B, N) row sq-norms
    u = (1.0 - inv_p * sq)[:, :, None]                         # (B, N, 1)  = 1 - |x_i|^2/p
    v = (-inv_p * sq)[:, None, :]                              # (B, 1, N)  = -|x_j|^2/p
    scale = (2.0 * inv_p).reshape((1,)).astype(jnp.float32)    # SMEM scalar

    TI, TJ = _pick_tiles(N, D, x.dtype.itemsize, ti_target, tj_target, vmem_budget_bytes)
    grid = (B, pl.cdiv(N, TI), pl.cdiv(N, TJ))

    cost = pl.CostEstimate(
        flops=int(2 * B * N * N * D + 4 * B * N * N),
        transcendentals=0,
        bytes_accessed=int(B * N * N * 4 + 2 * B * N * D * x.dtype.itemsize + 2 * B * N * 4),
    )

    out = pl.pallas_call(
        _unitcircle_tile_kernel,
        out_shape=jax.ShapeDtypeStruct((B, N, N), jnp.float32),
        grid=grid,
        in_specs=[
            pl.BlockSpec(memory_space=pltpu.MemorySpace.SMEM),          # scale (1,)
            pl.BlockSpec((None, TI, D), lambda b, i, j: (b, i, 0)),     # xi rows tile
            pl.BlockSpec((None, TJ, D), lambda b, i, j: (b, j, 0)),     # xj cols tile
            pl.BlockSpec((None, TI, 1), lambda b, i, j: (b, i, 0)),     # u_i
            pl.BlockSpec((None, 1, TJ), lambda b, i, j: (b, 0, j)),     # v_j
        ],
        out_specs=pl.BlockSpec((None, TI, TJ), lambda b, i, j: (b, i, j)),
        compiler_params=pltpu.CompilerParams(
            dimension_semantics=("parallel", "parallel", "parallel"),
            vmem_limit_bytes=vmem_limit_bytes),
        cost_estimate=cost,
    )(scale, x, x, u, v)

    return out.reshape((*lead, N, N))


def _reference_forward(vct, posnum):
    # Direct JAX transcription of the PyTorch forward for verification.
    vct_h = jnp.swapaxes(vct, -1, -2)[..., None, :, :]    # (..., 1, D, N)
    diff = vct_h - vct[..., None]                         # (..., N, D, N)
    norm = jnp.linalg.norm(diff, axis=-2)                 # (..., N, N)
    quad = norm ** 2
    return jnp.maximum(jnp.zeros((1,), vct.dtype), 1.0 - quad / (posnum + 1e-40))


if __name__ == "__main__":
    key = jax.random.PRNGKey(0)
    B, N, D = 2, 16, 8                               # batch=2, 16 points, feature dim 8
    vct = jax.random.normal(key, (B, N, D), dtype=jnp.float32)

    # Deterministic parameter init matching the module's __init__:
    ori_kernel_fish_posnum = jnp.float32(1.2)        # nn.Parameter(torch.tensor(1.2))

    # f32 path
    out = unitcircle_forward(vct, ori_kernel_fish_posnum)
    out = jax.block_until_ready(out)
    ref = _reference_forward(vct, ori_kernel_fish_posnum)
    assert out.shape == (B, N, N), out.shape
    assert jnp.allclose(out, ref, rtol=1e-4, atol=1e-4), float(jnp.max(jnp.abs(out - ref)))

    # native bf16 path (inputs stay bf16 through DMA and the MXU; f32 accumulation)
    out_bf = unitcircle_forward(vct.astype(jnp.bfloat16), ori_kernel_fish_posnum)
    out_bf = jax.block_until_ready(out_bf)
    ref_bf = _reference_forward(vct.astype(jnp.bfloat16).astype(jnp.float32),
                                ori_kernel_fish_posnum)
    assert jnp.allclose(out_bf, ref_bf, rtol=5e-3, atol=5e-3), \
        float(jnp.max(jnp.abs(out_bf - ref_bf)))

    print("KERNEL_OK")
</pallas_src>

<mosaic_0001>
module attributes {stable_mosaic.version = 11 : i64} {
  func.func @_unitcircle_tile_kernel(%arg0: i32, %arg1: i32, %arg2: i32, %arg3: memref<1xf32, #tpu.memory_space<smem>>, %arg4: memref<1x16x8xf32, #tpu.memory_space<vmem>>, %arg5: memref<1x16x8xf32, #tpu.memory_space<vmem>>, %arg6: memref<1x16x1xf32, #tpu.memory_space<vmem>>, %arg7: memref<1x1x16xf32, #tpu.memory_space<vmem>>, %arg8: memref<1x16x16xf32, #tpu.memory_space<vmem>>) attributes {dimension_semantics = [#tpu.dimension_semantics<parallel>, #tpu.dimension_semantics<parallel>, #tpu.dimension_semantics<parallel>], iteration_bounds = array<i64: 2, 1, 1>, scalar_prefetch = 0 : i64, scratch_operands = 0 : i64, tpu.core_type = #tpu.core_type<tc>, window_params = [{transform_indices = @transform_0, window_bounds = array<i64: 1>}, {transform_indices = @transform_1, window_bounds = array<i64: 1, 16, 8>}, {transform_indices = @transform_2, window_bounds = array<i64: 1, 16, 8>}, {transform_indices = @transform_3, window_bounds = array<i64: 1, 16, 1>}, {transform_indices = @transform_4, window_bounds = array<i64: 1, 1, 16>}, {transform_indices = @transform_5, window_bounds = array<i64: 1, 16, 16>}]} {
    %c0 = arith.constant 0 : index
    %c0_0 = arith.constant 0 : index
    %c0_1 = arith.constant 0 : index
    %0 = vector.load %arg4[%c0, %c0_0, %c0_1] : memref<1x16x8xf32, #tpu.memory_space<vmem>>, vector<1x16x8xf32>
    %1 = vector.shape_cast %0 : vector<1x16x8xf32> to vector<16x8xf32>
    %c0_2 = arith.constant 0 : index
    %c0_3 = arith.constant 0 : index
    %c0_4 = arith.constant 0 : index
    %2 = vector.load %arg5[%c0_2, %c0_3, %c0_4] : memref<1x16x8xf32, #tpu.memory_space<vmem>>, vector<1x16x8xf32>
    %3 = vector.shape_cast %2 : vector<1x16x8xf32> to vector<16x8xf32>
    %cst = arith.constant dense<0.000000e+00> : vector<16x16xf32>
    %4 = tpu.matmul %1, %3, %cst {dimension_numbers = #tpu.dot_dimension_numbers<[1], [1], [0], [0], [0, 0, 1, 0], [], []>} : vector<16x8xf32>, vector<16x8xf32>, vector<16x16xf32> -> vector<16x16xf32>
    %c0_5 = arith.constant 0 : index
    %5 = memref.load %arg3[%c0_5] : memref<1xf32, #tpu.memory_space<smem>>
    %6 = vector.broadcast %5 : f32 to vector<16x16xf32>
    %7 = arith.mulf %4, %6 : vector<16x16xf32>
    %c0_6 = arith.constant 0 : index
    %c0_7 = arith.constant 0 : index
    %c0_8 = arith.constant 0 : index
    %8 = vector.load %arg6[%c0_6, %c0_7, %c0_8] : memref<1x16x1xf32, #tpu.memory_space<vmem>>, vector<1x16x1xf32>
    %9 = vector.shape_cast %8 : vector<1x16x1xf32> to vector<16x1xf32>
    %c0_9 = arith.constant 0 : index
    %c0_10 = arith.constant 0 : index
    %c0_11 = arith.constant 0 : index
    %10 = vector.load %arg7[%c0_9, %c0_10, %c0_11] : memref<1x1x16xf32, #tpu.memory_space<vmem>>, vector<1x1x16xf32>
    %11 = vector.shape_cast %10 : vector<1x1x16xf32> to vector<1x16xf32>
    %12 = vector.broadcast %9 : vector<16x1xf32> to vector<16x16xf32>
    %13 = vector.broadcast %11 : vector<1x16xf32> to vector<16x16xf32>
    %14 = arith.addf %12, %13 : vector<16x16xf32>
    %15 = arith.addf %7, %14 : vector<16x16xf32>
    %cst_12 = arith.constant 0.000000e+00 : f32
    %cst_13 = arith.constant 1.000000e+00 : f32
    %16 = vector.broadcast %cst_12 : f32 to vector<16x16xf32>
    %17 = arith.maximumf %16, %15 : vector<16x16xf32>
    %18 = vector.broadcast %cst_13 : f32 to vector<16x16xf32>
    %19 = arith.minimumf %18, %17 : vector<16x16xf32>
    %c0_14 = arith.constant 0 : index
    %c0_15 = arith.constant 0 : index
    %c0_16 = arith.constant 0 : index
    %20 = vector.load %arg8[%c0_14, %c0_15, %c0_16] : memref<1x16x16xf32, #tpu.memory_space<vmem>>, vector<1x16x16xf32>
    %21 = vector.shape_cast %20 : vector<1x16x16xf32> to vector<16x16xf32>
    %22 = vector.shape_cast %19 : vector<16x16xf32> to vector<1x16x16xf32>
    tpu.vector_store %arg8[%c0_14, %c0_15, %c0_16], %22 {strides = array<i32>} : memref<1x16x16xf32, #tpu.memory_space<vmem>>, vector<1x16x16xf32>,
    return
  }
  func.func @transform_0(%arg0: i32, %arg1: i32, %arg2: i32) -> i32 {
    %c0_i32 = arith.constant 0 : i32
    %c0_i32_0 = arith.constant 0 : i32
    return %c0_i32 : i32
  }
  func.func @transform_1(%arg0: i32, %arg1: i32, %arg2: i32) -> (i32, i32, i32) {
    %c0_i32 = arith.constant 0 : i32
    %c0_i32_0 = arith.constant 0 : i32
    return %arg0, %arg1, %c0_i32 : i32, i32, i32
  }
  func.func @transform_2(%arg0: i32, %arg1: i32, %arg2: i32) -> (i32, i32, i32) {
    %c0_i32 = arith.constant 0 : i32
    %c0_i32_0 = arith.constant 0 : i32
    return %arg0, %arg2, %c0_i32 : i32, i32, i32
  }
  func.func @transform_3(%arg0: i32, %arg1: i32, %arg2: i32) -> (i32, i32, i32) {
    %c0_i32 = arith.constant 0 : i32
    %c0_i32_0 = arith.constant 0 : i32
    return %arg0, %arg1, %c0_i32 : i32, i32, i32
  }
  func.func @transform_4(%arg0: i32, %arg1: i32, %arg2: i32) -> (i32, i32, i32) {
    %c0_i32 = arith.constant 0 : i32
    %c0_i32_0 = arith.constant 0 : i32
    return %arg0, %c0_i32, %arg2 : i32, i32, i32
  }
  func.func @transform_5(%arg0: i32, %arg1: i32, %arg2: i32) -> (i32, i32, i32) {
    %c0_i32 = arith.constant 0 : i32
    return %arg0, %arg1, %arg2 : i32, i32, i32
  }
}

</mosaic_0001>

<bundles_post_ra>
// kernel: tpu_custom_call.1
= control target key start
LH: loop header
LB: loop body
LE: loop exit
PB: predicated region body
PF: predicated region fallthrough
CT: control target
= control target key end

     0   :  { %s982_s0 = inlined_call_operand.<no memory space> [shape: f32[1], index: 0, kind: input, shape index: {}]   ;;  %s983_s1 = inlined_call_operand.vmem [shape: f32[2,16,8], index: 1, kind: input, shape index: {}]   ;;  %s984_s2 = inlined_call_operand.vmem [shape: f32[2,16,8], index: 2, kind: input, shape index: {}]   ;;  %s985_s3 = inlined_call_operand.vmem [shape: f32[2,16,1], index: 3, kind: input, shape index: {}]   ;;  %s986_s4 = inlined_call_operand.vmem [shape: f32[2,1,16], index: 4, kind: input, shape index: {}]   ;;  %s987_s5 = inlined_call_operand.hbm [shape: f32[2,16,16], index: 5, kind: output, shape index: {}]  }
   0x1   :  { %10 = sst [smem:[#allocation2]] %s982_s0 }
   0x2   :  { %11 = vsyncpa [#allocation4], 0 }
   0x3   :  { %13 = vsyncpa [#allocation4 + $0x1], 0  ;;  %s854_s20 = smov 0   ;;  %s856_s21 = smov 0  }
   0x4   :  { %s858_s22 = smov 0   ;;  %s860_s23 = smov 0  }
   0x5   :  { %s862_s24 = smov 0   ;;  %s864_s25 = smov 0  }
   0x6 LB: > { %s635_s0 = sadd.s32 4294967295, %s815_s25   ;;  %s636_s26 = sadd.s32 4294967294, %s815_s25   ;;  %s815_s25 = sphi %s864_s25, %s19_s25   ;;  %s811_s24 = sphi %s862_s24, %s994_s24   ;;  %s807_s23 = sphi %s860_s23, %s993_s23   ;;  %s803_s22 = sphi %s858_s22, %s992_s22   ;;  %s799_s21 = sphi %s856_s21, %s991_s21   ;;  %s795_s20 = sphi %s854_s20, %s990_s20  }
   0x7   : > { %s38_s27 = sadd.s32 1, %s811_s24  ;;  %s182_s28 = sadd.s32 1, %s803_s22 }
   0x8   : > { %p40_p0 = scmp.ge.s32.totalorder %s38_s27, 2  ;;  %p192_p1 = scmp.ne.s32.totalorder %s803_s22, %s799_s21 }
   0x9   : > { %p193_p2 = scmp.eq.s32.totalorder %s635_s0, 1  ;;  %p198_p3 = scmp.ne.s32.totalorder %s799_s21, %s795_s20 }
   0xa   : > { %s996_s27 = smov (%p40_p0, %s38_s27), 0  ;;  %p199_p5 = scmp.eq.s32.totalorder %s636_s26, 1 }
   0xb   : > { %p894_p4 = por %p193_p2, %p192_p1  ;;  %s175_s30 = ssub.s32 %s811_s24, %s996_s27 }
   0xc   : > { %p639_p6 = scmp.ge.s32.totalorder %s815_s25, 1  ;;  %p180_p7 = scmp.eq.s32.totalorder %s175_s30, 0 }
   0xd   : > { %p901_p8 = por %p199_p5, %p198_p3  ;;  %p268_p9 = scmp.lt.s32.totalorder %s815_s25, 3 }
   0xe   : > { %s907_s7 = scalar_select %p180_p7, %s803_s22, %s182_s28  }
   0xf   : > { %p269_p10 = pnand %p639_p6, %p268_p9 }
  0x10   : > { %p325_p11 = scmp.lt.s32.totalorder (!%p269_p10), %s807_s23, 1  ;;  %v817_v0 = vmov (!%p269_p10), 0   ;;  %vm365_vm0 = vcmask (!%p269_p10), 64512   ;;  %s453_s19 = sld [smem:[#allocation2]] (!%p269_p10)  ;;  %vm484_vm2 = vcmask (!%p269_p10), 130048  }
  0x11   : > { %272 = sbr.rel (%p269_p10) target bundleno = 275 (0x113), region = 40  ;;  %736 = vset.pattern.permute.xlu0 (!%p269_p10), %v817_v0  ;;  %vm673_vm1 = vmpackc.low (!%p269_p10), %vm365_vm0, %vm365_vm0  ;;  %s321_s30 = sand.u32 (!%p269_p10), 1, %s799_s21  }
  0x12   : > { %s660_s10 = sshll.u32 (!%p269_p10), %s807_s23, 8  ;;  %s818_s16 = smov (!%p269_p10), [#allocation3]  }
  0x13   : > { %s932_s14 = scalar_lea.hbm (!%p269_p10), %s987_s5, %s660_s10  ;;  %s741_s17 = sshll.u32 (!%p269_p10), %s818_s16, 4  ;;  %s742_s17 = int_to_ptr.vmem [resolvable:$false] %s741_s17 }
  0x16   : > { %v454_v11 = vstv (!%p269_p10), %s453_s19 }
  0x18   : > { %s326_s8 = scalar_select %p325_p11, %s807_s23, 1 }
  0x19   : > { %s936_s23 = scalar_lea.sflag [#allocation4], %s321_s30 }
  0x1a   : > { %s657_s9 = sshll.u32 %s326_s8, 4  ;;  %s359_s28 = scalar_lea.vmem %s986_s4, %s326_s8 }
  0x1b   : > { %s342_s12 = scalar_lea.vmem %s984_s2, %s657_s9  ;;  %s332_s15 = scalar_lea.vmem %s983_s1, %s657_s9  ;;  %v651_v9 = vld [vmem:[%s359_s28] ss:$0 sm:$0xff] }
  0x1c   : > { %v363_v1 = vld [vmem:[%s342_s12] sm:$0xff]  ;;  %v364_v2 = vld [vmem:[%s342_s12 + $0x8] sm:$0xff]  ;;  %s352_s18 = scalar_lea.vmem %s985_s3, %s657_s9  ;;  %s640_s9 = sshll.u32 %s321_s30, 4 }
  0x1d   : > { %v361_v3 = vld [vmem:[%s332_s15] sm:$0xff]  ;;  %v672_v4 = vpack.c.bf16 %v364_v2, %v363_v1  ;;  %v458_v6 = vld [vmem:[%s352_s18 + $0x8] sm:$0xff]  ;;  %s323_s11 = scalar_lea.vmem [#allocation3], %s640_s9 }
  0x1e   : > { %669 = vmatprep.mubr.msk.f32.mxu0 %vm365_vm0, %v361_v3  ;;  %v457_v5 = vld [vmem:[%s352_s18] sm:$0xff]  ;;  %v362_v7 = vld [vmem:[%s332_s15 + $0x8] sm:$0xff]  ;;  %s504_s12 = sshll.u32 %s323_s11, 4  ;;  %s743_s18 = scalar_lea.vmem %s742_s17, 512  ;;  %s934_s12 = int_to_ptr.vmem [resolvable:$true] %s504_s12 }
  0x1f   : > { %462 = vperm.xlu0 %736, %v457_v5   ;;  %674 = vmatprep.subr.msk.bf16.mxu0 %vm673_vm1, %v672_v4  ;;  %s737_s15 = scalar_lea.vmem %s934_s12, 256  ;;  %p744_p1 = scmp.lt.s32.totalorder %s934_s12, %s742_s17 }
  0x20   : > { %677 = vmatpush3.bf16.xpose.msk.msra.mxu0 %vm673_vm1, %v672_v4  ;;  %p738_p12 = scmp.ne.s32.totalorder %s934_s12, %s737_s15  ;;  %p745_p2 = scmp.lt.s32.totalorder %s743_s18, %s737_s15 }
  0x22   : > { %p739_p13 = pnand %p738_p12, %p894_p4  ;;  %p746_p3 = por %p745_p2, %p744_p1 }
  0x23   : > { %467 = vperm.xlu0 %736, %v458_v6  }
  0x24   : > { %p740_p0 = pneg %p739_p13 }
  0x26   : > { %p747_p5 = pnand %p746_p3, %p740_p0 }
  0x27   : > { %670 = vmatmul.mubr.msk.f32.vlgmr.msra.gmra.mrb[0].mxu0 %vm365_vm0, %v362_v7 }
  0x9e   : > { %v463_v8 = vpop.permute.xlu0 %462 }
  0x9f   : > { %v476_v16 = vadd.f32 %v651_v9, %v463_v8 }
  0xa2   : > { %v468_v10 = vpop.permute.xlu0 %467 }
  0xa3   : > { %v477_v13 = vadd.f32 %v651_v9, %v468_v10 }
  0xfa   : > { %v671_v12 = vpop.f32.mrb[0].mxu0 }
  0xfb   : > { %v456_v14 = vmul.f32 %v671_v12, %v454_v11  ;;  %v444_v15 = vpop.f32.mrb[1].mxu0 }
  0xfc   : > { %v455_v17 = vmul.f32 %v454_v11, %v444_v15 }
  0xfd   : > { %v479_v18 = vadd.f32 %v477_v13, %v456_v14 }
  0xfe   : > { %v478_v19 = vadd.f32 %v476_v16, %v455_v17 }
  0xff   : > { %v481_v20 = vmax.f32 %v479_v18, 0.0 }
 0x100   : > { %v480_v21 = vmax.f32 %v478_v19, 0.0 }
 0x101   : > { %v483_v22 = vmin.f32 %v481_v20, 1.0 }
 0x102   : > { %v482_v23 = vmin.f32 %v480_v21, 1.0 }
 0x103   : > { %486 = vst.msk [vmem:[%s323_s11 + $0x8] sm:$0xff] %vm484_vm2, %v483_v22 }
 0x104   : > { %485 = vst.msk [vmem:[%s323_s11] sm:$0xff] %vm484_vm2, %v482_v23 }
 0x105   : > { %750 = shalt.err (!%p747_p5)
}
 0x106   : > { %s751_s19 = scalar_lea.hbm %s932_s14, 256  ;;  %s755_s28 = scalar_lea.hbm %s987_s5, 512 }
 0x107   : > { %p752_p6 = scmp.ne.s32.totalorder %s932_s14, %s751_s19  ;;  %p756_p10 = scmp.lt.u32.totalorder %s932_s14, %s987_s5 }
 0x108   : > { %p757_p11 = scmp.lt.u32.totalorder %s755_s28, %s751_s19  ;;  %p759_p13 = scmp.lt.u32.totalorder %s751_s19, %s932_s14 }
 0x109   : > { %p753_p7 = pnand %p752_p6, %p894_p4 }
 0x10a   : > { %p758_p12 = por %p757_p11, %p756_p10 }
 0x10b   : > { %p754_p9 = pneg %p753_p7 }
 0x10c   : > { %p760_p0 = por %p759_p13, %p758_p12 }
 0x10e   : > { %p761_p1 = pnand %p760_p0, %p754_p9 }
 0x110   : > { %764 = shalt.err (!%p761_p1)
}
 0x111   : > { %s819_s10 = smov 128   ;;  %s820_s11 = smov 8  }
 0x112   : > { %678 = dma.vmem_to_hbm [thread:$0]  (%p894_p4), %s934_s12, 256, %s932_s14, %s936_s23, %s819_s10, %s819_s10, %s820_s11  }
 0x113 PF: > { %p684_p2 = scmp.ge.s32.totalorder %s815_s25, 2  ;;  %s519_s8 = sand.u32 1, %s795_s20  }
 0x114   : > { %s520_s13 = scalar_lea.sflag [#allocation4], %s519_s8 }
 0x115   : > { %p681_p3 = pnand %p684_p2, %p901_p8 }
 0x117   : > { %790 = dma.done.wait (!%p681_p3), %s520_s13, 256  }
 0x118   : > { %792 = vsyncadd (!%p681_p3), %s520_s13, 4294967040  ;;  %s19_s25 = sadd.s32 1, %s815_s25   ;;  %s990_s20 = smov %s799_s21 }
 0x119   : > { %p16_p5 = scmp.ge.s32.totalorder %s19_s25, 4   ;;  %s991_s21 = smov %s803_s22 }
 0x11a   : > { %s992_s22 = smov %s907_s7  ;;  %s993_s23 = smov %s811_s24 }
 0x11b   : > { %s994_s24 = smov %s996_s27  ;;  %18 = sbr.rel (!%p16_p5) target bundleno = 6 (0x6), region = 84 }
 0x122   :  { %525 = vsyncpa [#allocation4], 1 }
 0x123   :  { %527 = vsyncpa [#allocation4 + $0x1], 1 }

</bundles_post_ra>
